<compile_context>
chip_gen: v6e
topology: v6e:2x2x1
jax: 0.10.0
libtpu: 0.0.40
codegen_flags: <defaults>
</compile_context>

<pallas_src>
import math
import numpy as np
import jax
import jax.numpy as jnp
from jax.experimental import pallas as pl
from jax.experimental.pallas import tpu as pltpu

D = 2        # stalk dimension d
SUB = 8      # vreg sublanes
LANE = 128   # TPU lane width


# ----------------- static graph helpers (mirror the torch helpers) -----------

def build_ring_edge_index(n):
    src, dst = [], []
    for i in range(n):
        j = (i + 1) % n
        src += [i, j]
        dst += [j, i]
    return np.array([src, dst], dtype=np.int64)


def degree(index, num_nodes):
    return np.bincount(index, minlength=num_nodes).astype(np.float32)


def compute_left_right_map_index(edge_index, full_matrix=False):
    E = edge_index.shape[1]
    edge_to_idx = {(int(edge_index[0, e]), int(edge_index[1, e])): e for e in range(E)}
    left, right, row, col = [], [], [], []
    for e in range(E):
        s, t = int(edge_index[0, e]), int(edge_index[1, e])
        if s < t or full_matrix:
            left.append(e)
            right.append(edge_to_idx[(t, s)])
            row.append(s)
            col.append(t)
    left_right = np.array([left, right], dtype=np.int64)
    new_edge_index = np.array([row, col], dtype=np.int64)
    return left_right, new_edge_index


def compute_learnable_laplacian_indices(size, tril_idx, learned_d, total_d):
    row, col = tril_idx
    rt = np.tile(np.arange(learned_d).reshape(1, -1, 1), (1, 1, learned_d))
    ct = np.transpose(rt, (0, 2, 1))
    nd_row = (rt + total_d * row.reshape(-1, 1, 1)).reshape(1, -1)
    nd_col = (ct + total_d * col.reshape(-1, 1, 1)).reshape(1, -1)
    non_diag = np.concatenate([nd_row, nd_col], axis=0)
    diag = np.arange(size)
    d_row = (rt + total_d * diag.reshape(-1, 1, 1)).reshape(1, -1)
    d_col = (ct + total_d * diag.reshape(-1, 1, 1)).reshape(1, -1)
    diag_ind = np.concatenate([d_row, d_col], axis=0)
    return diag_ind, non_diag


def compute_learnable_diag_laplacian_indices(size, tril_idx, learned_d, total_d):
    row, col = tril_idx
    rt = np.arange(0, learned_d).reshape(1, -1)
    ct = rt.copy()
    nd_row = (rt + total_d * row.reshape(-1, 1)).reshape(1, -1)
    nd_col = (ct + total_d * col.reshape(-1, 1)).reshape(1, -1)
    non_diag = np.concatenate([nd_row, nd_col], axis=0)
    diag = np.arange(size)
    d_row = (rt + total_d * diag.reshape(-1, 1)).reshape(1, -1)
    d_col = (ct + total_d * diag.reshape(-1, 1)).reshape(1, -1)
    diag_ind = np.concatenate([d_row, d_col], axis=0)
    return diag_ind, non_diag


def permute_indices_channel_major(tril_indices, num_edges, d):
    """Reorder tril_indices columns from edge-major (e, c) to channel-major (c, e).

    Static numpy glue: lets the kernel's (channel, sublane, lane) output be used
    flat without a post-kernel transpose of the values.
    """
    perm = (np.arange(d * d)[:, None] + d * d * np.arange(num_edges)[None, :]).reshape(-1)
    return tril_indices[:, perm]


# --------------------------------- kernel ------------------------------------

def edge_kernel(delta_ref, ls_ref, out_ref):
    """Per-tril-edge maps on a dense (SUB, C_TILE) slab of edges.

    delta_ref : (SUB, C)  theta_right - theta_left  per tril edge
    ls_ref    : (SUB, C)  rsqrt(deg_row+1) * rsqrt(deg_col+1) per tril edge
    out_ref   : (8, SUB, C)
        channels 0..3 : saved tril = -(L^T R)[i,j] = -R(2*pi*delta)[i,j]
        channels 4..7 : normalised tril = ls * saved
    Uses the identity R(a)^T R(b) = R(b-a): only one cos + one sin per slab.
    """
    two_pi = 2.0 * math.pi
    delta = delta_ref[...] * two_pi
    ls = ls_ref[...]
    cd = jnp.cos(delta)                 # EUP
    sd = jnp.sin(delta)                 # EUP
    lc = ls * cd
    lsd = ls * sd
    # saved = [[-cd, sd], [-sd, -cd]]
    out_ref[0] = -cd
    out_ref[1] = sd
    out_ref[2] = -sd
    out_ref[3] = -cd
    out_ref[4] = -lc
    out_ref[5] = lsd
    out_ref[6] = -lsd
    out_ref[7] = -lc


# ------------------------------ forward wrapper -------------------------------

def _pack_edge_rows(x, e2p, c_total):
    """Zero-pad a per-edge vector to e2p entries, lay out as (SUB, c_total)."""
    return jnp.pad(x, (0, e2p - x.shape[0])).reshape(SUB, c_total)


def norm_connection_laplacian_forward(map_params, static, *, tile_lanes=8192):
    # tile_lanes=8192 keeps per-step DMA (~2.6 MB) >> 0.35us step overhead while
    # staying ~5.2 MB double-buffered in VMEM (inside v5e/v6e/v7x defaults).
    d, N = static["d"], static["size"]
    left_idx, right_idx = static["left_idx"], static["right_idx"]
    tril_row, tril_col = static["tril_row"], static["tril_col"]
    deg = static["deg"]
    tril_indices_cm = static["tril_indices_cm"]     # channel-major column order
    diag_indices = static["diag_indices"]
    E2 = int(left_idx.shape[0])

    # ---- plain-JAX glue: gathers + per-node normalisers (O(N+E) scalars) ----
    dinv = jax.lax.rsqrt(deg + 1.0)                      # (deg+1)^(-1/2) per node
    delta = map_params[right_idx, 0] - map_params[left_idx, 0]
    ls = dinv[tril_row] * dinv[tril_col]                 # combined edge normaliser

    # ---- edge-dense tiling: edges across sublanes x lanes ----
    lanes_needed = pl.cdiv(E2, SUB)
    lanes_padded = pl.cdiv(lanes_needed, LANE) * LANE
    c_tile = min(int(tile_lanes), lanes_padded)
    # If the whole problem fits in a single step but is big enough, split into
    # >=2 grid steps so "parallel" can shard across v7x's two TensorCores
    # (one extra ~0.35us step is negligible on single-TC v5e/v6e).
    if c_tile == lanes_padded and lanes_padded >= 8 * LANE:
        c_tile = pl.cdiv(lanes_padded // LANE, 2) * LANE
    c_total = pl.cdiv(lanes_padded, c_tile) * c_tile
    e2p = SUB * c_total
    # edge e lives at (e // c_total, e % c_total) of every (SUB, c_total) slab.

    delta_p = _pack_edge_rows(delta, e2p, c_total)       # (SUB, c_total)
    ls_p = _pack_edge_rows(ls, e2p, c_total)             # (SUB, c_total)

    bytes_accessed = (2 * SUB + 2 * D * D * SUB) * c_total * 4
    out = pl.pallas_call(
        edge_kernel,
        out_shape=jax.ShapeDtypeStruct((2 * D * D, SUB, c_total), jnp.float32),
        grid_spec=pltpu.PrefetchScalarGridSpec(
            num_scalar_prefetch=0,
            grid=(c_total // c_tile,),
            in_specs=[pl.BlockSpec((SUB, c_tile), lambda i: (0, i)),
                      pl.BlockSpec((SUB, c_tile), lambda i: (0, i))],
            out_specs=pl.BlockSpec((2 * D * D, SUB, c_tile), lambda i: (0, 0, i))),
        compiler_params=pltpu.CompilerParams(dimension_semantics=("parallel",)),
        cost_estimate=pl.CostEstimate(flops=8 * e2p,
                                      transcendentals=2 * e2p,
                                      bytes_accessed=bytes_accessed),
    )(delta_p, ls_p)

    # ---- output unpacking: NO big transpose ----
    out_flat = out.reshape(2 * D * D, e2p)               # contiguous, free
    # Padded tail lanes hold garbage -> slice them off before use.
    saved_cm = out_flat[:D * D, :E2]                     # (4, E2) channel-major
    norm_cm = out_flat[D * D:, :E2]                      # (4, E2) channel-major
    # saved_tril keeps the torch module's (E, d, d) edge-major layout (small).
    saved_tril = saved_cm.T.reshape(E2, d, d)
    # Normalised values stay channel-major; tril_indices_cm is pre-permuted to
    # the matching column order, so the sparse (index, value) pair is identical
    # as a matrix to the torch module's output (entry ordering differs).
    tril_flat = norm_cm.reshape(-1)

    # diagonal maps: trivially small -> plain jnp (no second pallas_call)
    diag_vals = deg / (deg + 1.0)                        # ((deg+1)^-1/2)^2 * deg
    diag_flat = jnp.broadcast_to(diag_vals[:, None], (N, d)).reshape(-1)

    # glue: mergesp (concatenations of sparse indices / values)
    triu_indices = tril_indices_cm[::-1]
    non_diag_idx = jnp.concatenate([tril_indices_cm, triu_indices], axis=1)
    non_diag_val = jnp.concatenate([tril_flat, tril_flat])
    edge_index_out = jnp.concatenate([non_diag_idx, diag_indices], axis=1)
    weights = jnp.concatenate([non_diag_val, diag_flat])
    return (edge_index_out, weights), saved_tril


# ------------------------------ pure-JAX reference ----------------------------

def reference_forward(map_params, static):
    """Straight transcription of the torch forward (edge-major ordering)."""
    d, N = static["d"], static["size"]
    theta = map_params[:, 0] * (2.0 * math.pi)
    c, s = jnp.cos(theta), jnp.sin(theta)
    maps = jnp.stack([jnp.stack([c, -s], axis=-1),
                      jnp.stack([s, c], axis=-1)], axis=-2)      # (E, d, d)
    left = maps[static["left_idx"]]
    right = maps[static["right_idx"]]
    tril = -jnp.einsum("eki,ekj->eij", left, right)              # -L^T R
    saved = tril
    deg = static["deg"]
    dinv = jax.lax.rsqrt(deg + 1.0)
    tril_n = (dinv[static["tril_row"]][:, None, None] * tril
              * dinv[static["tril_col"]][:, None, None])
    diag_n = dinv * dinv * deg
    tril_flat = tril_n.reshape(-1)
    diag_flat = jnp.broadcast_to(diag_n[:, None], (N, d)).reshape(-1)
    tril_indices = static["tril_indices"]
    triu_indices = tril_indices[::-1]
    non_diag_idx = jnp.concatenate([tril_indices, triu_indices], axis=1)
    non_diag_val = jnp.concatenate([tril_flat, tril_flat])
    edge_index_out = jnp.concatenate([non_diag_idx, static["diag_indices"]], axis=1)
    weights = jnp.concatenate([non_diag_val, diag_flat])
    return (edge_index_out, weights), saved


def to_dense(edge_index, values, n):
    return jnp.zeros((n, n), jnp.float32).at[edge_index[0], edge_index[1]].add(values)


# ----------------------------------- main --------------------------------------

if __name__ == "__main__":
    N = 16
    d = D
    edge_index = build_ring_edge_index(N)               # (2, 32), both directions
    E = edge_index.shape[1]

    left_right_idx, vertex_tril_idx = compute_left_right_map_index(edge_index)
    _, tril_indices = compute_learnable_laplacian_indices(N, vertex_tril_idx, d, d)
    diag_indices, _ = compute_learnable_diag_laplacian_indices(N, vertex_tril_idx, d, d)
    deg = degree(edge_index[0], N)
    E2 = left_right_idx.shape[1]
    tril_indices_cm = permute_indices_channel_major(tril_indices, E2, d)

    static = dict(
        d=d, size=N,
        left_idx=jnp.asarray(left_right_idx[0], jnp.int32),
        right_idx=jnp.asarray(left_right_idx[1], jnp.int32),
        tril_row=jnp.asarray(vertex_tril_idx[0], jnp.int32),
        tril_col=jnp.asarray(vertex_tril_idx[1], jnp.int32),
        deg=jnp.asarray(deg, jnp.float32),
        tril_indices=jnp.asarray(tril_indices, jnp.int32),
        tril_indices_cm=jnp.asarray(tril_indices_cm, jnp.int32),
        diag_indices=jnp.asarray(diag_indices, jnp.int32),
    )

    key = jax.random.PRNGKey(0)
    # 'euler' orthogonal map with d=2 -> params (E, d*(d-1)//2) = (32, 1)
    map_params = jax.random.normal(key, (E, d * (d - 1) // 2), dtype=jnp.float32)

    (edge_index_out, weights), saved_tril = norm_connection_laplacian_forward(
        map_params, static)
    jax.block_until_ready((edge_index_out, weights, saved_tril))

    (ref_idx, ref_weights), ref_saved = reference_forward(map_params, static)

    # Shape checks (forward contract of the torch module).
    assert saved_tril.shape == (E2, d, d)
    assert weights.shape == ref_weights.shape
    assert edge_index_out.shape == (2, 2 * tril_indices.shape[1] + diag_indices.shape[1])

    # Value checks: the sparse (index, value) pair defines the same Laplacian
    # (kernel path uses a channel-major entry ordering), so compare densified.
    total_d = N * d
    dense_kernel = to_dense(edge_index_out, weights, total_d)
    dense_ref = to_dense(ref_idx, ref_weights, total_d)
    assert jnp.allclose(dense_kernel, dense_ref, atol=1e-5, rtol=1e-5)
    assert jnp.allclose(saved_tril, ref_saved, atol=1e-5, rtol=1e-5)

    print("KERNEL_OK")
</pallas_src>

<mosaic_0001>
module attributes {stable_mosaic.version = 11 : i64} {
  func.func @edge_kernel(%arg0: i32, %arg1: memref<8x128xf32, #tpu.memory_space<vmem>>, %arg2: memref<8x128xf32, #tpu.memory_space<vmem>>, %arg3: memref<8x8x128xf32, #tpu.memory_space<vmem>>) attributes {dimension_semantics = [#tpu.dimension_semantics<parallel>], iteration_bounds = array<i64: 1>, scalar_prefetch = 0 : i64, scratch_operands = 0 : i64, tpu.core_type = #tpu.core_type<tc>, window_params = [{transform_indices = @transform_0, window_bounds = array<i64: 8, 128>}, {transform_indices = @transform_1, window_bounds = array<i64: 8, 128>}, {transform_indices = @transform_2, window_bounds = array<i64: 8, 8, 128>}]} {
    %c0 = arith.constant 0 : index
    %c0_0 = arith.constant 0 : index
    %0 = vector.load %arg1[%c0, %c0_0] : memref<8x128xf32, #tpu.memory_space<vmem>>, vector<8x128xf32>
    %cst = arith.constant 6.28318548 : f32
    %1 = vector.broadcast %cst : f32 to vector<8x128xf32>
    %2 = arith.mulf %0, %1 : vector<8x128xf32>
    %c0_1 = arith.constant 0 : index
    %c0_2 = arith.constant 0 : index
    %3 = vector.load %arg2[%c0_1, %c0_2] : memref<8x128xf32, #tpu.memory_space<vmem>>, vector<8x128xf32>
    %4 = math.cos %2 : vector<8x128xf32>
    %5 = math.sin %2 : vector<8x128xf32>
    %6 = arith.mulf %3, %4 : vector<8x128xf32>
    %7 = arith.mulf %3, %5 : vector<8x128xf32>
    %cst_3 = arith.constant 0.000000e+00 : f32
    %8 = vector.broadcast %cst_3 : f32 to vector<8x128xf32>
    %9 = arith.subf %8, %4 : vector<8x128xf32>
    %c0_4 = arith.constant 0 : index
    %c0_5 = arith.constant 0 : index
    %c0_6 = arith.constant 0 : index
    %10 = vector.load %arg3[%c0_4, %c0_5, %c0_6] : memref<8x8x128xf32, #tpu.memory_space<vmem>>, vector<1x8x128xf32>
    %11 = vector.shape_cast %10 : vector<1x8x128xf32> to vector<8x128xf32>
    %12 = vector.shape_cast %9 : vector<8x128xf32> to vector<1x8x128xf32>
    tpu.vector_store %arg3[%c0_4, %c0_5, %c0_6], %12 {strides = array<i32>} : memref<8x8x128xf32, #tpu.memory_space<vmem>>, vector<1x8x128xf32>,
    %c1 = arith.constant 1 : index
    %c0_7 = arith.constant 0 : index
    %c0_8 = arith.constant 0 : index
    %13 = vector.load %arg3[%c1, %c0_7, %c0_8] : memref<8x8x128xf32, #tpu.memory_space<vmem>>, vector<1x8x128xf32>
    %14 = vector.shape_cast %13 : vector<1x8x128xf32> to vector<8x128xf32>
    %15 = vector.shape_cast %5 : vector<8x128xf32> to vector<1x8x128xf32>
    tpu.vector_store %arg3[%c1, %c0_7, %c0_8], %15 {strides = array<i32>} : memref<8x8x128xf32, #tpu.memory_space<vmem>>, vector<1x8x128xf32>,
    %cst_9 = arith.constant 0.000000e+00 : f32
    %16 = vector.broadcast %cst_9 : f32 to vector<8x128xf32>
    %17 = arith.subf %16, %5 : vector<8x128xf32>
    %c2 = arith.constant 2 : index
    %c0_10 = arith.constant 0 : index
    %c0_11 = arith.constant 0 : index
    %18 = vector.load %arg3[%c2, %c0_10, %c0_11] : memref<8x8x128xf32, #tpu.memory_space<vmem>>, vector<1x8x128xf32>
    %19 = vector.shape_cast %18 : vector<1x8x128xf32> to vector<8x128xf32>
    %20 = vector.shape_cast %17 : vector<8x128xf32> to vector<1x8x128xf32>
    tpu.vector_store %arg3[%c2, %c0_10, %c0_11], %20 {strides = array<i32>} : memref<8x8x128xf32, #tpu.memory_space<vmem>>, vector<1x8x128xf32>,
    %cst_12 = arith.constant 0.000000e+00 : f32
    %21 = vector.broadcast %cst_12 : f32 to vector<8x128xf32>
    %22 = arith.subf %21, %4 : vector<8x128xf32>
    %c3 = arith.constant 3 : index
    %c0_13 = arith.constant 0 : index
    %c0_14 = arith.constant 0 : index
    %23 = vector.load %arg3[%c3, %c0_13, %c0_14] : memref<8x8x128xf32, #tpu.memory_space<vmem>>, vector<1x8x128xf32>
    %24 = vector.shape_cast %23 : vector<1x8x128xf32> to vector<8x128xf32>
    %25 = vector.shape_cast %22 : vector<8x128xf32> to vector<1x8x128xf32>
    tpu.vector_store %arg3[%c3, %c0_13, %c0_14], %25 {strides = array<i32>} : memref<8x8x128xf32, #tpu.memory_space<vmem>>, vector<1x8x128xf32>,
    %cst_15 = arith.constant 0.000000e+00 : f32
    %26 = vector.broadcast %cst_15 : f32 to vector<8x128xf32>
    %27 = arith.subf %26, %6 : vector<8x128xf32>
    %c4 = arith.constant 4 : index
    %c0_16 = arith.constant 0 : index
    %c0_17 = arith.constant 0 : index
    %28 = vector.load %arg3[%c4, %c0_16, %c0_17] : memref<8x8x128xf32, #tpu.memory_space<vmem>>, vector<1x8x128xf32>
    %29 = vector.shape_cast %28 : vector<1x8x128xf32> to vector<8x128xf32>
    %30 = vector.shape_cast %27 : vector<8x128xf32> to vector<1x8x128xf32>
    tpu.vector_store %arg3[%c4, %c0_16, %c0_17], %30 {strides = array<i32>} : memref<8x8x128xf32, #tpu.memory_space<vmem>>, vector<1x8x128xf32>,
    %c5 = arith.constant 5 : index
    %c0_18 = arith.constant 0 : index
    %c0_19 = arith.constant 0 : index
    %31 = vector.load %arg3[%c5, %c0_18, %c0_19] : memref<8x8x128xf32, #tpu.memory_space<vmem>>, vector<1x8x128xf32>
    %32 = vector.shape_cast %31 : vector<1x8x128xf32> to vector<8x128xf32>
    %33 = vector.shape_cast %7 : vector<8x128xf32> to vector<1x8x128xf32>
    tpu.vector_store %arg3[%c5, %c0_18, %c0_19], %33 {strides = array<i32>} : memref<8x8x128xf32, #tpu.memory_space<vmem>>, vector<1x8x128xf32>,
    %cst_20 = arith.constant 0.000000e+00 : f32
    %34 = vector.broadcast %cst_20 : f32 to vector<8x128xf32>
    %35 = arith.subf %34, %7 : vector<8x128xf32>
    %c6 = arith.constant 6 : index
    %c0_21 = arith.constant 0 : index
    %c0_22 = arith.constant 0 : index
    %36 = vector.load %arg3[%c6, %c0_21, %c0_22] : memref<8x8x128xf32, #tpu.memory_space<vmem>>, vector<1x8x128xf32>
    %37 = vector.shape_cast %36 : vector<1x8x128xf32> to vector<8x128xf32>
    %38 = vector.shape_cast %35 : vector<8x128xf32> to vector<1x8x128xf32>
    tpu.vector_store %arg3[%c6, %c0_21, %c0_22], %38 {strides = array<i32>} : memref<8x8x128xf32, #tpu.memory_space<vmem>>, vector<1x8x128xf32>,
    %cst_23 = arith.constant 0.000000e+00 : f32
    %39 = vector.broadcast %cst_23 : f32 to vector<8x128xf32>
    %40 = arith.subf %39, %6 : vector<8x128xf32>
    %c7 = arith.constant 7 : index
    %c0_24 = arith.constant 0 : index
    %c0_25 = arith.constant 0 : index
    %41 = vector.load %arg3[%c7, %c0_24, %c0_25] : memref<8x8x128xf32, #tpu.memory_space<vmem>>, vector<1x8x128xf32>
    %42 = vector.shape_cast %41 : vector<1x8x128xf32> to vector<8x128xf32>
    %43 = vector.shape_cast %40 : vector<8x128xf32> to vector<1x8x128xf32>
    tpu.vector_store %arg3[%c7, %c0_24, %c0_25], %43 {strides = array<i32>} : memref<8x8x128xf32, #tpu.memory_space<vmem>>, vector<1x8x128xf32>,
    return
  }
  func.func @transform_0(%arg0: i32) -> (i32, i32) {
    %c0_i32 = arith.constant 0 : i32
    %c0_i32_0 = arith.constant 0 : i32
    return %c0_i32, %arg0 : i32, i32
  }
  func.func @transform_1(%arg0: i32) -> (i32, i32) {
    %c0_i32 = arith.constant 0 : i32
    %c0_i32_0 = arith.constant 0 : i32
    return %c0_i32, %arg0 : i32, i32
  }
  func.func @transform_2(%arg0: i32) -> (i32, i32, i32) {
    %c0_i32 = arith.constant 0 : i32
    %c0_i32_0 = arith.constant 0 : i32
    %c0_i32_1 = arith.constant 0 : i32
    return %c0_i32, %c0_i32_0, %arg0 : i32, i32, i32
  }
}

</mosaic_0001>

<bundles_post_ra>
// kernel: tpu_custom_call.1
= control target key start
LH: loop header
LB: loop body
LE: loop exit
PB: predicated region body
PF: predicated region fallthrough
CT: control target
= control target key end

     0   :  { %7 = vsyncpa [#allocation3], 0  ;;  %s434_s0 = inlined_call_operand.hbm [shape: f32[8,128], index: 0, kind: input, shape index: {}]   ;;  %s435_s1 = inlined_call_operand.hbm [shape: f32[8,128], index: 1, kind: input, shape index: {}]   ;;  %s436_s2 = inlined_call_operand.hbm [shape: f32[8,8,128], index: 2, kind: output, shape index: {}]  }
   0x1   :  { %8 = vsyncpa [#allocation6], 0 }
   0x2   :  { %9 = vsyncpa [#allocation4], 0  ;;  %s378_s9 = smov [#allocation2]   ;;  %s379_s11 = smov [#allocation5]  }
   0x3   :  { %s16_s10 = sshll.u32 %s378_s9, 4  ;;  %s26_s12 = sshll.u32 %s379_s11, 4  ;;  %s17_s10 = int_to_ptr.vmem [resolvable:$true] %s16_s10  ;;  %s27_s12 = int_to_ptr.vmem [resolvable:$true] %s26_s12 }
   0x4   :  { %s320_s13 = scalar_lea.vmem %s17_s10, 128  ;;  %p325_p1 = scmp.lt.s32.totalorder %s17_s10, %s17_s10 }
   0x5   :  { %p321_p0 = scmp.ne.s32.totalorder %s17_s10, %s320_s13  ;;  %p326_p2 = scmp.lt.s32.totalorder %s320_s13, %s320_s13 }
   0x7   :  { %p327_p3 = por %p326_p2, %p325_p1 }
   0x9   :  { %p328_p4 = pnand %p327_p3, %p321_p0 }
   0xb   :  { %331 = shalt.err (!%p328_p4)
}
   0xc   :  { %19 = dma.hbm_to_vmem [thread:$0]  %s434_s0, 128, %s17_s10, [#allocation3]  }
   0xd   :  { %s340_s16 = scalar_lea.vmem %s27_s12, 128  ;;  %p345_p6 = scmp.lt.s32.totalorder %s27_s12, %s27_s12 }
   0xe   :  { %p341_p5 = scmp.ne.s32.totalorder %s27_s12, %s340_s16  ;;  %p346_p7 = scmp.lt.s32.totalorder %s340_s16, %s340_s16 }
  0x10   :  { %p347_p8 = por %p346_p7, %p345_p6 }
  0x12   :  { %p348_p9 = pnand %p347_p8, %p341_p5 }
  0x14   :  { %351 = shalt.err (!%p348_p9)
}
  0x15   :  { %29 = dma.hbm_to_vmem [thread:$0]  %s435_s1, 128, %s27_s12, [#allocation6]  }
  0x16   :  { %372 = dma.done.wait [#allocation3], 128  }
  0x17   :  { %373 = vsyncadd [#allocation3], 4294967168 }
  0x18   :  { %374 = dma.done.wait [#allocation6], 128  }
  0x19   :  { %375 = vsyncadd [#allocation6], 4294967168  ;;  %v36_v0 = vld [vmem:[#allocation2] sm:$0xff]  ;;  %v380_v13 = vmov 683565275   ;;  %s386_s0 = smov [#allocation7]  }
  0x1a   :  { %v410_v1 = vmul.f32 6.2831855, %v36_v0  ;;  %v381_v15 = vmov 2475754826   ;;  %v382_v17 = vmov 2131351028  }
  0x1b   :  { %v383_v19 = vmov 2102212464   ;;  %v384_v21 = vmov 920167782   ;;  %v385_v28 = vmov 1326507024  }
  0x1c   :  { %v42_v2 = vand.u32 2139095040, %v410_v1  ;;  %v39_v4 = vand.u32 2147483647, %v410_v1  ;;  %vm41_vm7 = vcmp.lt.s32.totalorder %v410_v1, 0  ;;  %vm131_vm15 = vweird.f32 %v410_v1  ;;  %s272_s1 = sshll.u32 %s386_s0, 4  ;;  %s273_s1 = int_to_ptr.vmem [resolvable:$true] %s272_s1 }
  0x1d   :  { %s352_s19 = scalar_lea.vmem %s273_s1, 1024  ;;  %p357_p11 = scmp.lt.s32.totalorder %s273_s1, %s273_s1 }
  0x1e   :  { %v43_v3 = vshrl.u32 %v42_v2, 23  ;;  %v46_v7 = vand.u32 8388607, %v39_v4  ;;  %vm40_vm8 = vcmp.le.f32.partialorder %v39_v4, 0.7853982  ;;  %p353_p10 = scmp.ne.s32.totalorder %s273_s1, %s352_s19  ;;  %p358_p12 = scmp.lt.s32.totalorder %s352_s19, %s352_s19 }
  0x20   :  { %v285_v5 = vadd.s32 4294967169, %v43_v3  ;;  %v47_v10 = vor.u32 8388608, %v46_v7  ;;  %p359_p13 = por %p358_p12, %p357_p11 }
  0x22   :  { %v49_v6 = vadd.s32 1, %v285_v5  ;;  %v87_v30 = vshll.u32 %v47_v10, 8  ;;  %p360_p0 = pnand %p359_p13, %p353_p10 }
  0x24   :  { %vm50_vm0 = vcmp.gt.s32.totalorder %v49_v6, 0 }
  0x25   :  { %v51_v8 = vsel %vm50_vm0, %v49_v6, 0 }
  0x26   :  { %v53_v9 = vand.u32 31, %v51_v8  ;;  %v52_v11 = vshrl.u32 %v51_v8, 5 }
  0x28   :  { %v54_v12 = vsub.s32 32, %v53_v9  ;;  %v56_v14 = vshll.u32 %v380_v13, %v53_v9  ;;  %v59_v16 = vshll.u32 %v381_v15, %v53_v9  ;;  %v62_v18 = vshll.u32 %v382_v17, %v53_v9 }
  0x29   :  { %v65_v20 = vshll.u32 %v383_v19, %v53_v9  ;;  %v68_v22 = vshll.u32 %v384_v21, %v53_v9  ;;  %vm71_vm1 = vcmp.lt.s32.totalorder %v52_v11, 1  ;;  %vm74_vm2 = vcmp.lt.s32.totalorder %v52_v11, 4 }
  0x2a   :  { %v55_v23 = vshrl.u32 %v380_v13, %v54_v12  ;;  %v57_v24 = vshrl.u32 %v381_v15, %v54_v12  ;;  %v60_v25 = vshrl.u32 %v382_v17, %v54_v12  ;;  %v63_v26 = vshrl.u32 %v383_v19, %v54_v12 }
  0x2b   :  { %v66_v27 = vshrl.u32 %v384_v21, %v54_v12  ;;  %v69_v29 = vshrl.u32 %v385_v28, %v54_v12  ;;  %vm72_vm3 = vcmp.lt.s32.totalorder %v52_v11, 2  ;;  %vm73_vm4 = vcmp.lt.s32.totalorder %v52_v11, 3 }
  0x2c   :  { %v58_v31 = vor.u32 %v57_v24, %v56_v14  ;;  %v61_v32 = vor.u32 %v60_v25, %v59_v16  ;;  %v64_v33 = vor.u32 %v63_v26, %v62_v18 }
  0x2d   :  { %v67_v34 = vor.u32 %v66_v27, %v65_v20  ;;  %v70_v35 = vor.u32 %v69_v29, %v68_v22 }
  0x2e   :  { %v75_v36 = vsel %vm71_vm1, %v55_v23, %v58_v31  ;;  %v76_v37 = vsel %vm74_vm2, %v64_v33, 2102212464  ;;  %v79_v38 = vsel %vm71_vm1, %v58_v31, %v61_v32  ;;  %v83_v39 = vsel %vm71_vm1, %v61_v32, %v64_v33  ;;  %v38_v31 = vld [vmem:[#allocation5] sm:$0xff] }
  0x2f   :  { %v77_v40 = vsel %vm73_vm4, %v61_v32, %v76_v37  ;;  %v80_v41 = vsel %vm74_vm2, %v67_v34, 920167782  ;;  %v84_v42 = vsel %vm74_vm2, %v70_v35, 1326507024 }
  0x30   :  { %v81_v43 = vsel %vm73_vm4, %v64_v33, %v80_v41  ;;  %v85_v44 = vsel %vm73_vm4, %v67_v34, %v84_v42  ;;  %v78_v45 = vsel %vm72_vm3, %v75_v36, %v77_v40 }
  0x31   :  { %v82_v46 = vsel %vm72_vm3, %v79_v38, %v81_v43  ;;  %v86_v47 = vsel %vm72_vm3, %v83_v39, %v85_v44  ;;  %v94_v52 = vmul.u32 %v87_v30, %v78_v45 }
  0x32   :  { %v416_v48 = vmul.u32.u64.low %v87_v30, %v86_v47  ;;  %v417_v49 = vmul.u32.u64.high %v87_v30, %v86_v47, %v416_v48  ;;  %v419_v50 = vmul.u32.u64.low %v87_v30, %v82_v46  ;;  %v420_v51 = vmul.u32.u64.high %v87_v30, %v82_v46, %v419_v50 }
  0x34   :  { %vm96_vm5 = vc.u32 %v417_v49, %v419_v50  ;;  %v97_v53 = vadd.s32 1, %v420_v51  ;;  %v95_v0 = vadd.s32 %v419_v50, %v417_v49 }
  0x36   :  { %v98_v54 = vsel %vm96_vm5, %v97_v53, %v420_v51 }
  0x37   :  { %v99_v55 = vadd.s32 %v98_v54, %v94_v52 }
  0x39   :  { %v100_v56 = vadd.s32 536870912, %v99_v55 }
  0x3b   :  { %v101_v57 = vshrl.u32 %v100_v56, 30 }
  0x3d   :  { %v102_v58 = vshll.u32 %v101_v57, 30  ;;  %v125_v15 = vsub.s32 4, %v101_v57 }
  0x3f   :  { %v103_v59 = vsub.s32 %v99_v55, %v102_v58  ;;  %v126_v18 = vsel %vm41_vm7, %v125_v15, %v101_v57 }
  0x40   :  { %v128_v20 = vsel %vm40_vm8, 0, %v126_v18 }
  0x41   :  { %v105_v60 = vsub.s32 0, %v103_v59  ;;  %v235_v21 = vadd.s32 3, %v128_v20  ;;  %v132_v22 = vand.u32 3, %v128_v20 }
  0x43   :  { %v286_v61 = vmin.u32 %v105_v60, %v103_v59  ;;  %v236_v23 = vand.u32 3, %v235_v21  ;;  %vm137_vm9 = vcmp.eq.s32.totalorder %v132_v22, 2  ;;  %vm134_vm11 = vcmp.eq.s32.totalorder %v132_v22, 0 }
  0x44   :  { %vm133_vm13 = vcmp.lt.s32.totalorder %v132_v22, 2 }
  0x45   :  { %v107_v62 = vclz %v286_v61  ;;  %vm241_vm10 = vcmp.eq.s32.totalorder %v236_v23, 2  ;;  %vm238_vm12 = vcmp.eq.s32.totalorder %v236_v23, 0  ;;  %vm237_vm14 = vcmp.lt.s32.totalorder %v236_v23, 2 }
  0x47   :  { %v287_v63 = vadd.s32 4294967294, %v107_v62 }
  0x49   :  { %vm288_vm6 = vcmp.lt.s32.totalorder %v287_v63, 0 }
  0x4a   :  { %v110_v2 = vsel %vm288_vm6, 0, %v287_v63 }
  0x4b   :  { %v111_v3 = vsub.s32 32, %v110_v2  ;;  %v112_v5 = vshll.u32 %v103_v59, %v110_v2  ;;  %v115_v6 = vsub.s32 4294967266, %v110_v2 }
  0x4d   :  { %v113_v7 = vshrl.u32 %v95_v0, %v111_v3  ;;  %v116_v8 = vadd.s32 127, %v115_v6 }
  0x4f   :  { %v114_v9 = vor.u32 %v113_v7, %v112_v5  ;;  %v117_v10 = vshll.u32 %v116_v8, 23 }
  0x51   :  { %v118_v11 = vor.u32 4788187, %v117_v10  ;;  %v121_v12 = vcvt.s32.f32 %v114_v9 }
  0x53   :  { %v119_v13 = vand.u32 2147483647, %v118_v11 }
  0x55   :  { %v122_v14 = vmul.f32 %v121_v12, %v119_v13 }
  0x57   :  { %v123_v16 = vxor.u32 2147483648, %v122_v14 }
  0x59   :  { %v124_v17 = vsel %vm41_vm7, %v123_v16, %v122_v14 }
  0x5a   :  { %v127_v19 = vsel %vm40_vm8, %v410_v1, %v124_v17 }
  0x5b   :  { %308 = vcosq.f32 %v127_v19 }
  0x5c   :  { %310 = vsinq.f32 %v127_v19 }
  0x68   :  { %v309_v24 = vpop.eup %308 }
  0x69   :  { %v311_v25 = vpop.eup %310  ;;  %v138_v26 = vxor.u32 2147483648, %v309_v24 }
  0x6a   :  { %v135_v4 = vxor.u32 2147483648, %v311_v25 }
  0x6b   :  { %v139_v27 = vsel %vm137_vm9, %v138_v26, %v311_v25  ;;  %v243_v28 = vsel %vm241_vm10, %v138_v26, %v311_v25 }
  0x6c   :  { %v136_v29 = vsel %vm134_vm11, %v309_v24, %v135_v4  ;;  %v240_v30 = vsel %vm238_vm12, %v309_v24, %v135_v4 }
  0x6d   :  { %v140_v32 = vsel %vm133_vm13, %v136_v29, %v139_v27  ;;  %v244_v33 = vsel %vm237_vm14, %v240_v30, %v243_v28 }
  0x6e   :  { %v141_v34 = vsel %vm131_vm15, nan, %v140_v32  ;;  %v245_v35 = vsel %vm131_vm15, nan, %v244_v33 }
  0x6f   :  { %v248_v36 = vsub.f32 0.0, %v141_v34  ;;  %251 = vst [vmem:[#allocation7 + $0x8] sm:$0xff] %v245_v35  ;;  %v252_v37 = vsub.f32 0.0, %v245_v35  ;;  %v246_v38 = vmul.f32 %v141_v34, %v38_v31  ;;  %v247_v39 = vmul.f32 %v245_v35, %v38_v31 }
  0x71   :  { %249 = vst [vmem:[#allocation7] sm:$0xff] %v248_v36  ;;  %256 = vst [vmem:[#allocation7 + $0x18] sm:$0xff] %v248_v36  ;;  %v257_v1 = vsub.f32 0.0, %v246_v38  ;;  %v262_v40 = vsub.f32 0.0, %v247_v39 }
  0x72   :  { %254 = vst [vmem:[#allocation7 + $0x10] sm:$0xff] %v252_v37  ;;  %261 = vst [vmem:[#allocation7 + $0x28] sm:$0xff] %v247_v39 }
  0x73   :  { %259 = vst [vmem:[#allocation7 + $0x20] sm:$0xff] %v257_v1  ;;  %266 = vst [vmem:[#allocation7 + $0x38] sm:$0xff] %v257_v1 }
  0x74   :  { %264 = vst [vmem:[#allocation7 + $0x30] sm:$0xff] %v262_v40 }
  0x75   :  { %363 = shalt.err (!%p360_p0)
}
  0x76   :  { %s387_s20 = smov 128   ;;  %s388_s21 = smov 8  }
  0x77   :  { %278 = dma.vmem_to_hbm [thread:$0]  %s273_s1, 1024, %s436_s2, [#allocation4], %s387_s20, %s387_s20, %s388_s21  }
  0x78   :  { %376 = dma.done.wait [#allocation4], 1024  }
  0x79   :  { %377 = vsyncadd [#allocation4], 4294966272 }
  0x7a   :  { %282 = vsyncpa [#allocation3], 1 }
  0x7b   :  { %283 = vsyncpa [#allocation6], 1 }
  0x7c   :  { %284 = vsyncpa [#allocation4], 1 }

</bundles_post_ra>
